<compile_context>
chip_gen: v7x
topology: tpu7x:2x2x1
jax: 0.10.0
libtpu: 0.0.40
codegen_flags: <defaults>
</compile_context>

<pallas_src>
import functools

import jax
import jax.numpy as jnp
from jax import lax
from jax.experimental import pallas as pl
from jax.experimental.pallas import tpu as pltpu

_LANE = 128
_MIB = 1024 * 1024


def _round_up(a, b):
    return (a + b - 1) // b * b


def _vmem_limit_bytes():
    """Generation-aware scoped-VMEM request with headroom for Mosaic scratch."""
    try:
        cap = pltpu.get_tpu_info().vmem_capacity_bytes
    except Exception:  # no TPU info available -> conservative default
        cap = 64 * _MIB
    # v7x (64 MiB/TC) -> ~48 MiB; v5e/v6e (128 MiB) -> ~104 MiB.
    return int(max(min(cap - 16 * _MIB, 104 * _MIB), 32 * _MIB))


def _layout(n):
    """Padded node count + (row tile, contraction tile, decoder tile)."""
    if n <= 512:
        n_p = _round_up(n, _LANE)
        tm = n_p
    else:
        n_p = _round_up(n, 512)
        tm = 512
    tk = tm
    td = 1024 if n_p % 1024 == 0 else tm
    return n_p, tm, tk, td


# ---------------------------------------------------------------------------
# Kernel 0: small dense feature matmul  xw1 = x @ W1   (row-tiled, W resident).
# ---------------------------------------------------------------------------
def _feat_matmul_kernel(x_ref, w_ref, out_ref):
    out_ref[...] = jnp.dot(
        x_ref[...], w_ref[...], preferred_element_type=jnp.float32
    ).astype(out_ref.dtype)


def _feat_matmul(x_p, w_p, *, tm, out_dtype, vmem_limit):
    n_p, f_p = x_p.shape
    h_p = w_p.shape[1]
    return pl.pallas_call(
        _feat_matmul_kernel,
        out_shape=jax.ShapeDtypeStruct((n_p, h_p), out_dtype),
        grid=(n_p // tm,),
        in_specs=[
            pl.BlockSpec((tm, f_p), lambda i: (i, 0)),      # x row tile (streamed)
            pl.BlockSpec((f_p, h_p), lambda i: (0, 0)),     # W1: VMEM-resident
        ],
        out_specs=pl.BlockSpec((tm, h_p), lambda i: (i, 0)),
        compiler_params=pltpu.CompilerParams(
            dimension_semantics=("parallel",),
            vmem_limit_bytes=vmem_limit,
        ),
        cost_estimate=pl.CostEstimate(
            flops=2 * n_p * f_p * h_p,
            transcendentals=0,
            bytes_accessed=2 * (n_p * f_p + f_p * h_p + n_p * h_p),
        ),
    )(x_p, w_p)


# ---------------------------------------------------------------------------
# Kernel 1: layer-1 propagation with fused W2 epilogue.
#   out_tile = relu(adj_tile @ xw1) @ W2, K-tiled over adj columns with an f32
#   accumulator (init at k==0, relu + W2 + store at k==last).
# ---------------------------------------------------------------------------
def _gc1_fused_kernel(adj_ref, xw1_ref, w2_ref, out_ref, acc_ref):
    @pl.when(pl.program_id(1) == 0)
    def _():
        acc_ref[...] = jnp.zeros_like(acc_ref)

    acc_ref[...] += jnp.dot(adj_ref[...], xw1_ref[...],
                            preferred_element_type=jnp.float32)

    @pl.when(pl.program_id(1) == pl.num_programs(1) - 1)
    def _():
        h1 = jnp.maximum(acc_ref[...], 0.0)                    # relu in f32
        out = jnp.dot(h1.astype(w2_ref.dtype), w2_ref[...],
                      preferred_element_type=jnp.float32)
        out_ref[...] = out.astype(out_ref.dtype)


def _gc1_fused(adj_p, xw1_p, w2_p, *, tm, tk, out_dtype, vmem_limit):
    n_p = adj_p.shape[0]
    h1_p = xw1_p.shape[1]
    h2_p = w2_p.shape[1]
    return pl.pallas_call(
        _gc1_fused_kernel,
        out_shape=jax.ShapeDtypeStruct((n_p, h2_p), out_dtype),
        grid=(n_p // tm, n_p // tk),
        in_specs=[
            pl.BlockSpec((tm, tk), lambda i, k: (i, k)),       # adj tile (streamed)
            pl.BlockSpec((tk, h1_p), lambda i, k: (k, 0)),     # xw1 slab (small)
            pl.BlockSpec((h1_p, h2_p), lambda i, k: (0, 0)),   # W2 (grid-invariant)
        ],
        out_specs=pl.BlockSpec((tm, h2_p), lambda i, k: (i, 0)),
        scratch_shapes=[pltpu.VMEM((tm, h1_p), jnp.float32)],
        compiler_params=pltpu.CompilerParams(
            dimension_semantics=("parallel", "arbitrary"),
            vmem_limit_bytes=vmem_limit,
        ),
        cost_estimate=pl.CostEstimate(
            flops=2 * n_p * n_p * h1_p + 2 * n_p * h1_p * h2_p,
            transcendentals=0,
            bytes_accessed=2 * n_p * n_p
            + 2 * n_p * h1_p * (n_p // tm)
            + 2 * n_p * h2_p,
        ),
    )(adj_p, xw1_p, w2_p)


# ---------------------------------------------------------------------------
# Kernel 2: plain propagation  out = adj @ feat  (layer 2), same K-tiling.
# ---------------------------------------------------------------------------
def _propagate_kernel(adj_ref, feat_ref, out_ref, acc_ref):
    @pl.when(pl.program_id(1) == 0)
    def _():
        acc_ref[...] = jnp.zeros_like(acc_ref)

    acc_ref[...] += jnp.dot(adj_ref[...], feat_ref[...],
                            preferred_element_type=jnp.float32)

    @pl.when(pl.program_id(1) == pl.num_programs(1) - 1)
    def _():
        out_ref[...] = acc_ref[...].astype(out_ref.dtype)


def _propagate(adj_p, feat_p, *, tm, tk, out_dtype, vmem_limit):
    n_p = adj_p.shape[0]
    h_p = feat_p.shape[1]
    return pl.pallas_call(
        _propagate_kernel,
        out_shape=jax.ShapeDtypeStruct((n_p, h_p), out_dtype),
        grid=(n_p // tm, n_p // tk),
        in_specs=[
            pl.BlockSpec((tm, tk), lambda i, k: (i, k)),
            pl.BlockSpec((tk, h_p), lambda i, k: (k, 0)),
        ],
        out_specs=pl.BlockSpec((tm, h_p), lambda i, k: (i, 0)),
        scratch_shapes=[pltpu.VMEM((tm, h_p), jnp.float32)],
        compiler_params=pltpu.CompilerParams(
            dimension_semantics=("parallel", "arbitrary"),
            vmem_limit_bytes=vmem_limit,
        ),
        cost_estimate=pl.CostEstimate(
            flops=2 * n_p * n_p * h_p,
            transcendentals=0,
            bytes_accessed=2 * n_p * n_p
            + 2 * n_p * h_p * (n_p // tm)
            + 2 * n_p * h_p,
        ),
    )(adj_p, feat_p)


# ---------------------------------------------------------------------------
# Kernel 3: InnerProductDecoder (identity act), tiled over (row, col) blocks.
#   dot_general contracts dim 1 of BOTH operands -> no transposed z copy.
# ---------------------------------------------------------------------------
def _decoder_kernel(zr_ref, zc_ref, out_ref):
    out_ref[...] = lax.dot_general(
        zr_ref[...], zc_ref[...],
        dimension_numbers=(((1,), (1,)), ((), ())),
        preferred_element_type=jnp.float32,
    ).astype(out_ref.dtype)


def _inner_product_decoder(z_p, *, td, out_dtype, vmem_limit):
    n_p, h_p = z_p.shape
    out_bytes = jnp.dtype(out_dtype).itemsize
    return pl.pallas_call(
        _decoder_kernel,
        out_shape=jax.ShapeDtypeStruct((n_p, n_p), out_dtype),
        grid=(n_p // td, n_p // td),
        in_specs=[
            pl.BlockSpec((td, h_p), lambda i, j: (i, 0)),
            pl.BlockSpec((td, h_p), lambda i, j: (j, 0)),
        ],
        out_specs=pl.BlockSpec((td, td), lambda i, j: (i, j)),
        compiler_params=pltpu.CompilerParams(
            dimension_semantics=("parallel", "parallel"),
            vmem_limit_bytes=vmem_limit,
        ),
        cost_estimate=pl.CostEstimate(
            flops=2 * n_p * n_p * h_p,
            transcendentals=0,
            bytes_accessed=n_p * n_p * out_bytes + 4 * n_p * h_p * (n_p // td),
        ),
    )(z_p, z_p)


# ---------------------------------------------------------------------------
# Wrapper: (cast/pad if needed) -> four pallas_call stages -> slice back.
# ---------------------------------------------------------------------------
@functools.partial(jax.jit, static_argnames=("compute_dtype", "adj_rec_dtype"))
def gcn_model_ae_forward(x, adj, w1, w2, *,
                         compute_dtype=jnp.bfloat16,
                         adj_rec_dtype=jnp.float32):
    """Fused GCN-AE forward. Returns (adj_rec, z) like the torch module."""
    n, f_in = x.shape
    h2 = w2.shape[1]

    n_p, tm, tk, td = _layout(n)
    f_p = _round_up(f_in, _LANE)
    h1_p = _round_up(w1.shape[1], _LANE)
    h2_p = _round_up(h2, _LANE)
    vmem_limit = _vmem_limit_bytes()

    def pad_cast(a, shape):
        a = a.astype(compute_dtype)
        if a.shape == shape:                 # already aligned: cast only, no copy
            return a
        return jnp.zeros(shape, compute_dtype).at[: a.shape[0], : a.shape[1]].set(a)

    x_p = pad_cast(x, (n_p, f_p))
    adj_p = pad_cast(adj, (n_p, n_p))
    w1_p = pad_cast(w1, (f_p, h1_p))
    w2_p = pad_cast(w2, (h1_p, h2_p))

    # xw1 = x @ W1 (small dense matmul, done once).
    xw1_p = _feat_matmul(x_p, w1_p, tm=tm, out_dtype=compute_dtype,
                         vmem_limit=vmem_limit)
    # Layer 1 propagation with fused W2 epilogue: h1w2 = relu(adj @ xw1) @ W2.
    h1w2_p = _gc1_fused(adj_p, xw1_p, w2_p, tm=tm, tk=tk,
                        out_dtype=compute_dtype, vmem_limit=vmem_limit)
    # Layer 2 propagation: z = adj @ h1w2.
    z_p = _propagate(adj_p, h1w2_p, tm=tm, tk=tk, out_dtype=compute_dtype,
                     vmem_limit=vmem_limit)
    # Decoder: adj_rec = z @ z.T.
    adj_rec_p = _inner_product_decoder(z_p, td=td, out_dtype=adj_rec_dtype,
                                       vmem_limit=vmem_limit)

    adj_rec = adj_rec_p[:n, :n]
    z = z_p[:n, :h2].astype(jnp.float32)
    return adj_rec, z


# ---------------------------------------------------------------------------
# References.
# ---------------------------------------------------------------------------
def _reference_f32(x, adj, w1, w2):
    hidden1 = jnp.maximum(adj @ (x @ w1), 0.0)
    z = adj @ (hidden1 @ w2)
    return z @ z.T, z


def _reference_matched(x, adj, w1, w2, dtype=jnp.bfloat16):
    # Mirrors the kernel's casting chain and association exactly (tight check).
    f32 = jnp.float32
    xc, ac, w1c, w2c = (a.astype(dtype) for a in (x, adj, w1, w2))
    xw1 = jnp.dot(xc, w1c, preferred_element_type=f32).astype(dtype)
    agg1 = jnp.dot(ac, xw1, preferred_element_type=f32)
    h1w2 = jnp.dot(jnp.maximum(agg1, 0.0).astype(dtype), w2c,
                   preferred_element_type=f32).astype(dtype)
    z = jnp.dot(ac, h1w2, preferred_element_type=f32).astype(dtype)
    adj_rec = lax.dot_general(z, z, (((1,), (1,)), ((), ())),
                              preferred_element_type=f32)
    return adj_rec, z.astype(f32)


if __name__ == "__main__":
    # Small shapes consistent with the module:
    #   N nodes = 128, input_feat_dim = 32, hidden_dim1 = 32, hidden_dim2 = 16
    N, F_IN, H1, H2 = 128, 32, 32, 16

    key = jax.random.PRNGKey(0)
    kx, ka, kw1, kw2 = jax.random.split(key, 4)

    x = jax.random.normal(kx, (N, F_IN), dtype=jnp.float32)

    # Symmetric, row-normalized dense adjacency with self-loops.
    raw = (jax.random.uniform(ka, (N, N)) > 0.9).astype(jnp.float32)
    adj = jnp.maximum(raw, raw.T) + jnp.eye(N, dtype=jnp.float32)
    deg = jnp.sum(adj, axis=1, keepdims=True)
    adj = adj / deg

    # Glorot-style weight init (matches GraphConvolution shapes).
    lim1 = (6.0 / (F_IN + H1)) ** 0.5
    lim2 = (6.0 / (H1 + H2)) ** 0.5
    w1 = jax.random.uniform(kw1, (F_IN, H1), minval=-lim1, maxval=lim1,
                            dtype=jnp.float32)
    w2 = jax.random.uniform(kw2, (H1, H2), minval=-lim2, maxval=lim2,
                            dtype=jnp.float32)

    adj_rec, z = jax.block_until_ready(gcn_model_ae_forward(x, adj, w1, w2))

    # Tight check against a reference using the same bf16 casting/association.
    m_adj_rec, m_z = _reference_matched(x, adj, w1, w2)
    assert jnp.allclose(adj_rec, m_adj_rec, atol=1e-3, rtol=1e-3)
    assert jnp.allclose(z, m_z, atol=1e-3, rtol=1e-3)

    # Loose fidelity check against the pure-f32 module semantics (bf16 MXU inputs).
    f_adj_rec, f_z = _reference_f32(x, adj, w1, w2)
    assert jnp.allclose(adj_rec, f_adj_rec, atol=1e-1, rtol=1e-1)
    assert jnp.allclose(z, f_z, atol=1e-1, rtol=1e-1)

    print("KERNEL_OK")
</pallas_src>

<mosaic_0001>
module attributes {stable_mosaic.version = 11 : i64} {
  func.func @_gc1_fused_kernel(%arg0: i32, %arg1: i32, %arg2: memref<128x128xbf16, #tpu.memory_space<vmem>>, %arg3: memref<128x128xbf16, #tpu.memory_space<vmem>>, %arg4: memref<128x128xbf16, #tpu.memory_space<vmem>>, %arg5: memref<128x128xbf16, #tpu.memory_space<vmem>>, %arg6: memref<128x128xf32, #tpu.memory_space<vmem>>) attributes {dimension_semantics = [#tpu.dimension_semantics<parallel>, #tpu.dimension_semantics<arbitrary>], iteration_bounds = array<i64: 1, 1>, scalar_prefetch = 0 : i64, scratch_operands = 1 : i64, tpu.core_type = #tpu.core_type<tc>, window_params = [{transform_indices = @transform_0, window_bounds = array<i64: 128, 128>}, {transform_indices = @transform_1, window_bounds = array<i64: 128, 128>}, {pipeline_mode = #tpu.pipeline_mode<synchronous>, transform_indices = @transform_2, window_bounds = array<i64: 128, 128>}, {transform_indices = @transform_3, window_bounds = array<i64: 128, 128>}]} {
    %c0_i32 = arith.constant 0 : i32
    %0 = arith.cmpi eq, %arg1, %c0_i32 : i32
    %1 = arith.extui %0 : i1 to i32
    %c0_i32_0 = arith.constant 0 : i32
    %2 = arith.cmpi ne, %1, %c0_i32_0 : i32
    scf.if %2 {
      %cst_10 = arith.constant 0.000000e+00 : f32
      %12 = vector.broadcast %cst_10 : f32 to vector<128x128xf32>
      %c0_11 = arith.constant 0 : index
      %c0_12 = arith.constant 0 : index
      %13 = vector.load %arg6[%c0_11, %c0_12] : memref<128x128xf32, #tpu.memory_space<vmem>>, vector<128x128xf32>
      tpu.vector_store %arg6[%c0_11, %c0_12], %12 {strides = array<i32>} : memref<128x128xf32, #tpu.memory_space<vmem>>, vector<128x128xf32>,
    } else {
    }
    %c0 = arith.constant 0 : index
    %c0_1 = arith.constant 0 : index
    %3 = vector.load %arg6[%c0, %c0_1] : memref<128x128xf32, #tpu.memory_space<vmem>>, vector<128x128xf32>
    %c0_2 = arith.constant 0 : index
    %c0_3 = arith.constant 0 : index
    %4 = vector.load %arg2[%c0_2, %c0_3] : memref<128x128xbf16, #tpu.memory_space<vmem>>, vector<128x128xbf16>
    %c0_4 = arith.constant 0 : index
    %c0_5 = arith.constant 0 : index
    %5 = vector.load %arg3[%c0_4, %c0_5] : memref<128x128xbf16, #tpu.memory_space<vmem>>, vector<128x128xbf16>
    %cst = arith.constant dense<0.000000e+00> : vector<128x128xf32>
    %6 = tpu.matmul %4, %5, %cst {dimension_numbers = #tpu.dot_dimension_numbers<[1], [0], [0], [1], [0, 0, 1, 1], [], []>} : vector<128x128xbf16>, vector<128x128xbf16>, vector<128x128xf32> -> vector<128x128xf32>
    %7 = arith.addf %3, %6 : vector<128x128xf32>
    %c0_6 = arith.constant 0 : index
    %c0_7 = arith.constant 0 : index
    %8 = vector.load %arg6[%c0_6, %c0_7] : memref<128x128xf32, #tpu.memory_space<vmem>>, vector<128x128xf32>
    tpu.vector_store %arg6[%c0_6, %c0_7], %7 {strides = array<i32>} : memref<128x128xf32, #tpu.memory_space<vmem>>, vector<128x128xf32>,
    %c0_i32_8 = arith.constant 0 : i32
    %9 = arith.cmpi eq, %arg1, %c0_i32_8 : i32
    %10 = arith.extui %9 : i1 to i32
    %c0_i32_9 = arith.constant 0 : i32
    %11 = arith.cmpi ne, %10, %c0_i32_9 : i32
    scf.if %11 {
      %c0_10 = arith.constant 0 : index
      %c0_11 = arith.constant 0 : index
      %12 = vector.load %arg6[%c0_10, %c0_11] : memref<128x128xf32, #tpu.memory_space<vmem>>, vector<128x128xf32>
      %cst_12 = arith.constant 0.000000e+00 : f32
      %13 = vector.broadcast %cst_12 : f32 to vector<128x128xf32>
      %14 = arith.maximumf %12, %13 : vector<128x128xf32>
      %15 = arith.truncf %14 : vector<128x128xf32> to vector<128x128xbf16>
      %c0_13 = arith.constant 0 : index
      %c0_14 = arith.constant 0 : index
      %16 = vector.load %arg4[%c0_13, %c0_14] : memref<128x128xbf16, #tpu.memory_space<vmem>>, vector<128x128xbf16>
      %cst_15 = arith.constant dense<0.000000e+00> : vector<128x128xf32>
      %17 = tpu.matmul %15, %16, %cst_15 {dimension_numbers = #tpu.dot_dimension_numbers<[1], [0], [0], [1], [0, 0, 1, 1], [], []>} : vector<128x128xbf16>, vector<128x128xbf16>, vector<128x128xf32> -> vector<128x128xf32>
      %18 = arith.truncf %17 : vector<128x128xf32> to vector<128x128xbf16>
      %c0_16 = arith.constant 0 : index
      %c0_17 = arith.constant 0 : index
      %19 = vector.load %arg5[%c0_16, %c0_17] : memref<128x128xbf16, #tpu.memory_space<vmem>>, vector<128x128xbf16>
      tpu.vector_store %arg5[%c0_16, %c0_17], %18 {strides = array<i32>} : memref<128x128xbf16, #tpu.memory_space<vmem>>, vector<128x128xbf16>,
    } else {
    }
    return
  }
  func.func @transform_0(%arg0: i32, %arg1: i32) -> (i32, i32) {
    %c0_i32 = arith.constant 0 : i32
    return %arg0, %arg1 : i32, i32
  }
  func.func @transform_1(%arg0: i32, %arg1: i32) -> (i32, i32) {
    %c0_i32 = arith.constant 0 : i32
    %c0_i32_0 = arith.constant 0 : i32
    return %arg1, %c0_i32 : i32, i32
  }
  func.func @transform_2(%arg0: i32, %arg1: i32) -> (i32, i32) {
    %c0_i32 = arith.constant 0 : i32
    %c0_i32_0 = arith.constant 0 : i32
    %c0_i32_1 = arith.constant 0 : i32
    return %c0_i32, %c0_i32_0 : i32, i32
  }
  func.func @transform_3(%arg0: i32, %arg1: i32) -> (i32, i32) {
    %c0_i32 = arith.constant 0 : i32
    %c0_i32_0 = arith.constant 0 : i32
    return %arg0, %c0_i32 : i32, i32
  }
}

module attributes {stable_mosaic.version = 11 : i64} {
  func.func @_feat_matmul_kernel(%arg0: i32, %arg1: memref<128x128xbf16, #tpu.memory_space<vmem>>, %arg2: memref<128x128xbf16, #tpu.memory_space<vmem>>, %arg3: memref<128x128xbf16, #tpu.memory_space<vmem>>) attributes {dimension_semantics = [#tpu.dimension_semantics<parallel>], iteration_bounds = array<i64: 1>, scalar_prefetch = 0 : i64, scratch_operands = 0 : i64, tpu.core_type = #tpu.core_type<tc>, window_params = [{transform_indices = @transform_0, window_bounds = array<i64: 128, 128>}, {pipeline_mode = #tpu.pipeline_mode<synchronous>, transform_indices = @transform_1, window_bounds = array<i64: 128, 128>}, {transform_indices = @transform_2, window_bounds = array<i64: 128, 128>}]} {
    %c0 = arith.constant 0 : index
    %c0_0 = arith.constant 0 : index
    %0 = vector.load %arg1[%c0, %c0_0] : memref<128x128xbf16, #tpu.memory_space<vmem>>, vector<128x128xbf16>
    %c0_1 = arith.constant 0 : index
    %c0_2 = arith.constant 0 : index
    %1 = vector.load %arg2[%c0_1, %c0_2] : memref<128x128xbf16, #tpu.memory_space<vmem>>, vector<128x128xbf16>
    %cst = arith.constant dense<0.000000e+00> : vector<128x128xf32>
    %2 = tpu.matmul %0, %1, %cst {dimension_numbers = #tpu.dot_dimension_numbers<[1], [0], [0], [1], [0, 0, 1, 1], [], []>} : vector<128x128xbf16>, vector<128x128xbf16>, vector<128x128xf32> -> vector<128x128xf32>
    %3 = arith.truncf %2 : vector<128x128xf32> to vector<128x128xbf16>
    %c0_3 = arith.constant 0 : index
    %c0_4 = arith.constant 0 : index
    %4 = vector.load %arg3[%c0_3, %c0_4] : memref<128x128xbf16, #tpu.memory_space<vmem>>, vector<128x128xbf16>
    tpu.vector_store %arg3[%c0_3, %c0_4], %3 {strides = array<i32>} : memref<128x128xbf16, #tpu.memory_space<vmem>>, vector<128x128xbf16>,
    return
  }
  func.func @transform_0(%arg0: i32) -> (i32, i32) {
    %c0_i32 = arith.constant 0 : i32
    %c0_i32_0 = arith.constant 0 : i32
    return %arg0, %c0_i32 : i32, i32
  }
  func.func @transform_1(%arg0: i32) -> (i32, i32) {
    %c0_i32 = arith.constant 0 : i32
    %c0_i32_0 = arith.constant 0 : i32
    %c0_i32_1 = arith.constant 0 : i32
    return %c0_i32, %c0_i32_0 : i32, i32
  }
  func.func @transform_2(%arg0: i32) -> (i32, i32) {
    %c0_i32 = arith.constant 0 : i32
    %c0_i32_0 = arith.constant 0 : i32
    return %arg0, %c0_i32 : i32, i32
  }
}

module attributes {stable_mosaic.version = 11 : i64} {
  func.func @_propagate_kernel(%arg0: i32, %arg1: i32, %arg2: memref<128x128xbf16, #tpu.memory_space<vmem>>, %arg3: memref<128x128xbf16, #tpu.memory_space<vmem>>, %arg4: memref<128x128xbf16, #tpu.memory_space<vmem>>, %arg5: memref<128x128xf32, #tpu.memory_space<vmem>>) attributes {dimension_semantics = [#tpu.dimension_semantics<parallel>, #tpu.dimension_semantics<arbitrary>], iteration_bounds = array<i64: 1, 1>, scalar_prefetch = 0 : i64, scratch_operands = 1 : i64, tpu.core_type = #tpu.core_type<tc>, window_params = [{transform_indices = @transform_0, window_bounds = array<i64: 128, 128>}, {transform_indices = @transform_1, window_bounds = array<i64: 128, 128>}, {transform_indices = @transform_2, window_bounds = array<i64: 128, 128>}]} {
    %c0_i32 = arith.constant 0 : i32
    %0 = arith.cmpi eq, %arg1, %c0_i32 : i32
    %1 = arith.extui %0 : i1 to i32
    %c0_i32_0 = arith.constant 0 : i32
    %2 = arith.cmpi ne, %1, %c0_i32_0 : i32
    scf.if %2 {
      %cst_10 = arith.constant 0.000000e+00 : f32
      %12 = vector.broadcast %cst_10 : f32 to vector<128x128xf32>
      %c0_11 = arith.constant 0 : index
      %c0_12 = arith.constant 0 : index
      %13 = vector.load %arg5[%c0_11, %c0_12] : memref<128x128xf32, #tpu.memory_space<vmem>>, vector<128x128xf32>
      tpu.vector_store %arg5[%c0_11, %c0_12], %12 {strides = array<i32>} : memref<128x128xf32, #tpu.memory_space<vmem>>, vector<128x128xf32>,
    } else {
    }
    %c0 = arith.constant 0 : index
    %c0_1 = arith.constant 0 : index
    %3 = vector.load %arg5[%c0, %c0_1] : memref<128x128xf32, #tpu.memory_space<vmem>>, vector<128x128xf32>
    %c0_2 = arith.constant 0 : index
    %c0_3 = arith.constant 0 : index
    %4 = vector.load %arg2[%c0_2, %c0_3] : memref<128x128xbf16, #tpu.memory_space<vmem>>, vector<128x128xbf16>
    %c0_4 = arith.constant 0 : index
    %c0_5 = arith.constant 0 : index
    %5 = vector.load %arg3[%c0_4, %c0_5] : memref<128x128xbf16, #tpu.memory_space<vmem>>, vector<128x128xbf16>
    %cst = arith.constant dense<0.000000e+00> : vector<128x128xf32>
    %6 = tpu.matmul %4, %5, %cst {dimension_numbers = #tpu.dot_dimension_numbers<[1], [0], [0], [1], [0, 0, 1, 1], [], []>} : vector<128x128xbf16>, vector<128x128xbf16>, vector<128x128xf32> -> vector<128x128xf32>
    %7 = arith.addf %3, %6 : vector<128x128xf32>
    %c0_6 = arith.constant 0 : index
    %c0_7 = arith.constant 0 : index
    %8 = vector.load %arg5[%c0_6, %c0_7] : memref<128x128xf32, #tpu.memory_space<vmem>>, vector<128x128xf32>
    tpu.vector_store %arg5[%c0_6, %c0_7], %7 {strides = array<i32>} : memref<128x128xf32, #tpu.memory_space<vmem>>, vector<128x128xf32>,
    %c0_i32_8 = arith.constant 0 : i32
    %9 = arith.cmpi eq, %arg1, %c0_i32_8 : i32
    %10 = arith.extui %9 : i1 to i32
    %c0_i32_9 = arith.constant 0 : i32
    %11 = arith.cmpi ne, %10, %c0_i32_9 : i32
    scf.if %11 {
      %c0_10 = arith.constant 0 : index
      %c0_11 = arith.constant 0 : index
      %12 = vector.load %arg5[%c0_10, %c0_11] : memref<128x128xf32, #tpu.memory_space<vmem>>, vector<128x128xf32>
      %13 = arith.truncf %12 : vector<128x128xf32> to vector<128x128xbf16>
      %c0_12 = arith.constant 0 : index
      %c0_13 = arith.constant 0 : index
      %14 = vector.load %arg4[%c0_12, %c0_13] : memref<128x128xbf16, #tpu.memory_space<vmem>>, vector<128x128xbf16>
      tpu.vector_store %arg4[%c0_12, %c0_13], %13 {strides = array<i32>} : memref<128x128xbf16, #tpu.memory_space<vmem>>, vector<128x128xbf16>,
    } else {
    }
    return
  }
  func.func @transform_0(%arg0: i32, %arg1: i32) -> (i32, i32) {
    %c0_i32 = arith.constant 0 : i32
    return %arg0, %arg1 : i32, i32
  }
  func.func @transform_1(%arg0: i32, %arg1: i32) -> (i32, i32) {
    %c0_i32 = arith.constant 0 : i32
    %c0_i32_0 = arith.constant 0 : i32
    return %arg1, %c0_i32 : i32, i32
  }
  func.func @transform_2(%arg0: i32, %arg1: i32) -> (i32, i32) {
    %c0_i32 = arith.constant 0 : i32
    %c0_i32_0 = arith.constant 0 : i32
    return %arg0, %c0_i32 : i32, i32
  }
}

module attributes {stable_mosaic.version = 11 : i64} {
  func.func @_decoder_kernel(%arg0: i32, %arg1: i32, %arg2: memref<128x128xbf16, #tpu.memory_space<vmem>>, %arg3: memref<128x128xbf16, #tpu.memory_space<vmem>>, %arg4: memref<128x128xf32, #tpu.memory_space<vmem>>) attributes {dimension_semantics = [#tpu.dimension_semantics<parallel>, #tpu.dimension_semantics<parallel>], iteration_bounds = array<i64: 1, 1>, scalar_prefetch = 0 : i64, scratch_operands = 0 : i64, tpu.core_type = #tpu.core_type<tc>, window_params = [{transform_indices = @transform_0, window_bounds = array<i64: 128, 128>}, {transform_indices = @transform_1, window_bounds = array<i64: 128, 128>}, {transform_indices = @transform_2, window_bounds = array<i64: 128, 128>}]} {
    %c0 = arith.constant 0 : index
    %c0_0 = arith.constant 0 : index
    %0 = vector.load %arg2[%c0, %c0_0] : memref<128x128xbf16, #tpu.memory_space<vmem>>, vector<128x128xbf16>
    %c0_1 = arith.constant 0 : index
    %c0_2 = arith.constant 0 : index
    %1 = vector.load %arg3[%c0_1, %c0_2] : memref<128x128xbf16, #tpu.memory_space<vmem>>, vector<128x128xbf16>
    %cst = arith.constant dense<0.000000e+00> : vector<128x128xf32>
    %2 = tpu.matmul %0, %1, %cst {dimension_numbers = #tpu.dot_dimension_numbers<[1], [1], [0], [0], [0, 0, 1, 0], [], []>} : vector<128x128xbf16>, vector<128x128xbf16>, vector<128x128xf32> -> vector<128x128xf32>
    %c0_3 = arith.constant 0 : index
    %c0_4 = arith.constant 0 : index
    %3 = vector.load %arg4[%c0_3, %c0_4] : memref<128x128xf32, #tpu.memory_space<vmem>>, vector<128x128xf32>
    tpu.vector_store %arg4[%c0_3, %c0_4], %2 {strides = array<i32>} : memref<128x128xf32, #tpu.memory_space<vmem>>, vector<128x128xf32>,
    return
  }
  func.func @transform_0(%arg0: i32, %arg1: i32) -> (i32, i32) {
    %c0_i32 = arith.constant 0 : i32
    %c0_i32_0 = arith.constant 0 : i32
    return %arg0, %c0_i32 : i32, i32
  }
  func.func @transform_1(%arg0: i32, %arg1: i32) -> (i32, i32) {
    %c0_i32 = arith.constant 0 : i32
    %c0_i32_0 = arith.constant 0 : i32
    return %arg1, %c0_i32 : i32, i32
  }
  func.func @transform_2(%arg0: i32, %arg1: i32) -> (i32, i32) {
    %c0_i32 = arith.constant 0 : i32
    return %arg0, %arg1 : i32, i32
  }
}

</mosaic_0001>

<bundles_post_ra>
// kernel: gcn_model_ae_forward.7
= control target key start
LH: loop header
LB: loop body
LE: loop exit
PB: predicated region body
PF: predicated region fallthrough
CT: control target
= control target key end

     0   :  { %s471_s0 = inlined_call_operand.vmem [shape: bf16[128,128], index: 0, kind: input, shape index: {}, may-alias: {0,1}]   ;;  %s472_s1 = inlined_call_operand.vmem [shape: bf16[128,128], index: 1, kind: input, shape index: {}, may-alias: {0,1}]   ;;  %s473_s2 = inlined_call_operand.hbm [shape: f32[128,128], index: 2, kind: output, shape index: {}]  }
   0x1   :  { %v353_v0 = vld [vmem:[%s472_s1] sm:$0xff]   ;;  %v354_v1 = vld [vmem:[%s472_s1 + $0x8] sm:$0xff]   ;;  %v355_v2 = vld [vmem:[%s472_s1 + $0x10] sm:$0xff]  }
   0x2   :  { %302 = vmatprep.subr.bf16.mxu0 %v353_v0  ;;  %334 = vmatprep.subr.bf16.mxu1 %v353_v0  ;;  %v361_v3 = vld [vmem:[%s471_s0] sm:$0xff]   ;;  %v356_v5 = vld [vmem:[%s472_s1 + $0x18] sm:$0xff]  }
   0x3   :  { %303 = vmatpush3.bf16.xpose.msra.mxu0 %v353_v0  ;;  %342 = vmatpush3.bf16.xpose.msra.mxu1 %v353_v0  ;;  %v362_v4 = vld [vmem:[%s471_s0 + $0x20] sm:$0xff]  }
   0x4   :  { %304 = vmatprep.subr.bf16.mxu0 %v354_v1  ;;  %335 = vmatprep.subr.bf16.mxu1 %v354_v1 }
   0x5   :  { %318 = vmatprep.mubr.bf16.mxu0 %v361_v3  ;;  %326 = vmatprep.mubr.bf16.mxu1 %v362_v4 }
   0xb   :  { %305 = vmatpush3.bf16.xpose.msra.mxu0 %v354_v1  ;;  %343 = vmatpush3.bf16.xpose.msra.mxu1 %v354_v1 }
   0xc   :  { %306 = vmatprep.subr.bf16.mxu0 %v355_v2  ;;  %336 = vmatprep.subr.bf16.mxu1 %v355_v2 }
   0xd   :  { %7 = vsyncpa [#allocation3], 0  ;;  %v357_v6 = vld [vmem:[%s472_s1 + $0x20] sm:$0xff]   ;;  %v358_v7 = vld [vmem:[%s472_s1 + $0x28] sm:$0xff]   ;;  %s393_s12 = smov [#allocation2]  }
   0xe   :  { %v359_v8 = vld [vmem:[%s472_s1 + $0x30] sm:$0xff]   ;;  %v360_v9 = vld [vmem:[%s472_s1 + $0x38] sm:$0xff]   ;;  %v363_v10 = vld [vmem:[%s471_s0 + $0x8] sm:$0xff]  }
   0xf   :  { %v364_v11 = vld [vmem:[%s471_s0 + $0x28] sm:$0xff]   ;;  %v365_v12 = vld [vmem:[%s471_s0 + $0x10] sm:$0xff]   ;;  %v367_v14 = vld [vmem:[%s471_s0 + $0x18] sm:$0xff]  }
  0x10   :  { %v366_v13 = vld [vmem:[%s471_s0 + $0x30] sm:$0xff]   ;;  %v368_v15 = vld [vmem:[%s471_s0 + $0x38] sm:$0xff]   ;;  %s259_s0 = sshll.u32 %s393_s12, 4  ;;  %s260_s0 = int_to_ptr.vmem [resolvable:$true] %s259_s0 }
  0x11   :  { %s369_s13 = scalar_lea.vmem %s260_s0, 2048  ;;  %p374_p1 = scmp.lt.s32.totalorder %s260_s0, %s260_s0 }
  0x12   :  { %p370_p0 = scmp.ne.s32.totalorder %s260_s0, %s369_s13  ;;  %p375_p2 = scmp.lt.s32.totalorder %s369_s13, %s369_s13 }
  0x13   :  { %307 = vmatpush3.bf16.xpose.msra.mxu0 %v355_v2  ;;  %344 = vmatpush3.bf16.xpose.msra.mxu1 %v355_v2 }
  0x14   :  { %308 = vmatprep.subr.bf16.mxu0 %v356_v5  ;;  %337 = vmatprep.subr.bf16.mxu1 %v356_v5  ;;  %p376_p3 = por %p375_p2, %p374_p1 }
  0x16   :  { %p377_p4 = pnand %p376_p3, %p370_p0 }
  0x1b   :  { %309 = vmatpush3.bf16.xpose.msra.mxu0 %v356_v5  ;;  %345 = vmatpush3.bf16.xpose.msra.mxu1 %v356_v5 }
  0x1c   :  { %310 = vmatprep.subr.bf16.mxu0 %v357_v6  ;;  %338 = vmatprep.subr.bf16.mxu1 %v357_v6 }
  0x23   :  { %311 = vmatpush3.bf16.xpose.msra.mxu0 %v357_v6  ;;  %346 = vmatpush3.bf16.xpose.msra.mxu1 %v357_v6 }
  0x24   :  { %312 = vmatprep.subr.bf16.mxu0 %v358_v7  ;;  %339 = vmatprep.subr.bf16.mxu1 %v358_v7 }
  0x2b   :  { %313 = vmatpush3.bf16.xpose.msra.mxu0 %v358_v7  ;;  %347 = vmatpush3.bf16.xpose.msra.mxu1 %v358_v7 }
  0x2c   :  { %314 = vmatprep.subr.bf16.mxu0 %v359_v8  ;;  %340 = vmatprep.subr.bf16.mxu1 %v359_v8 }
  0x33   :  { %315 = vmatpush3.bf16.xpose.msra.mxu0 %v359_v8  ;;  %348 = vmatpush3.bf16.xpose.msra.mxu1 %v359_v8 }
  0x34   :  { %316 = vmatprep.subr.bf16.mxu0 %v360_v9  ;;  %341 = vmatprep.subr.bf16.mxu1 %v360_v9 }
  0x3b   :  { %317 = vmatpush3.bf16.xpose.msra.mxu0 %v360_v9  ;;  %349 = vmatpush3.bf16.xpose.msra.mxu1 %v360_v9 }
  0x42   :  { %319 = vmatmul.mubr.bf16.vlgmr.msra.gmra.mrb[0].mxu0 %v363_v10  ;;  %327 = vmatmul.mubr.bf16.vlgmr.msra.gmra.mrb[0].mxu1 %v364_v11 }
  0x43   :  { %322 = vmatprep.mubr.bf16.mxu0 %v365_v12  ;;  %330 = vmatprep.mubr.bf16.mxu1 %v366_v13 }
  0x4a   :  { %323 = vmatmul.mubr.bf16.gmra.mrb[4].mxu0 %v367_v14  ;;  %331 = vmatmul.mubr.bf16.gmra.mrb[4].mxu1 %v368_v15 }
 0x115   :  { %v320_v16 = vpop.f32.mrb[0].mxu0  ;;  %v328_v17 = vpop.f32.mrb[0].mxu1 }
 0x116   :  { %240 = vst [vmem:[#allocation2 + $0x10] sm:$0xff] %v320_v16  ;;  %248 = vst [vmem:[#allocation2 + $0x50] sm:$0xff] %v328_v17  ;;  %v175_v18 = vpop.f32.mrb[1].mxu0  ;;  %v207_v19 = vpop.f32.mrb[1].mxu1 }
 0x117   :  { %238 = vst [vmem:[#allocation2] sm:$0xff] %v175_v18  ;;  %246 = vst [vmem:[#allocation2 + $0x40] sm:$0xff] %v207_v19  ;;  %v321_v20 = vpop.f32.mrb[2].mxu0  ;;  %v329_v21 = vpop.f32.mrb[2].mxu1 }
 0x118   :  { %241 = vst [vmem:[#allocation2 + $0x18] sm:$0xff] %v321_v20  ;;  %249 = vst [vmem:[#allocation2 + $0x58] sm:$0xff] %v329_v21  ;;  %v178_v22 = vpop.f32.mrb[3].mxu0  ;;  %v210_v23 = vpop.f32.mrb[3].mxu1 }
 0x119   :  { %239 = vst [vmem:[#allocation2 + $0x8] sm:$0xff] %v178_v22  ;;  %247 = vst [vmem:[#allocation2 + $0x48] sm:$0xff] %v210_v23 }
 0x11d   :  { %v324_v24 = vpop.f32.mrb[4].mxu0  ;;  %v332_v25 = vpop.f32.mrb[4].mxu1 }
 0x11e   :  { %244 = vst [vmem:[#allocation2 + $0x30] sm:$0xff] %v324_v24  ;;  %252 = vst [vmem:[#allocation2 + $0x70] sm:$0xff] %v332_v25  ;;  %v191_v26 = vpop.f32.mrb[5].mxu0  ;;  %v223_v27 = vpop.f32.mrb[5].mxu1 }
 0x11f   :  { %242 = vst [vmem:[#allocation2 + $0x20] sm:$0xff] %v191_v26  ;;  %250 = vst [vmem:[#allocation2 + $0x60] sm:$0xff] %v223_v27  ;;  %v325_v28 = vpop.f32.mrb[6].mxu0  ;;  %v333_v29 = vpop.f32.mrb[6].mxu1 }
 0x120   :  { %245 = vst [vmem:[#allocation2 + $0x38] sm:$0xff] %v325_v28  ;;  %253 = vst [vmem:[#allocation2 + $0x78] sm:$0xff] %v333_v29  ;;  %v194_v30 = vpop.f32.mrb[7].mxu0  ;;  %v226_v31 = vpop.f32.mrb[7].mxu1 }
 0x121   :  { %243 = vst [vmem:[#allocation2 + $0x28] sm:$0xff] %v194_v30  ;;  %251 = vst [vmem:[#allocation2 + $0x68] sm:$0xff] %v226_v31 }
 0x122   :  { %380 = shalt.err (!%p377_p4)
}
 0x123   :  { %s381_s16 = scalar_lea.hbm %s473_s2, 2048 }
 0x124   :  { %p382_p5 = scmp.ne.s32.totalorder %s473_s2, %s381_s16  ;;  %p385_p6 = scmp.lt.u32.totalorder %s381_s16, %s473_s2 }
 0x126   :  { %p387_p7 = pnand %p385_p6, %p382_p5 }
 0x128   :  { %390 = shalt.err (!%p387_p7)
}
 0x129   :  { %s394_s21 = smov 128   ;;  %s395_s22 = smov 8  }
 0x12a   :  { %265 = dma.vmem_to_hbm [thread:$0]  %s260_s0, 2048, %s473_s2, [#allocation3], %s394_s21, %s394_s21, %s395_s22  }
 0x12b   :  { %391 = dma.done.wait [#allocation3], 2048  }
 0x12c   :  { %392 = vsyncadd [#allocation3], 4294965248 }
 0x12d   :  { %269 = vsyncpa [#allocation3], 1 }

// kernel: gcn_model_ae_forward.6
= control target key start
LH: loop header
LB: loop body
LE: loop exit
PB: predicated region body
PF: predicated region fallthrough
CT: control target
= control target key end

     0   :  { %s670_s1 = inlined_call_operand.vmem [shape: bf16[128,128], index: 1, kind: input, shape index: {}]   ;;  %s671_s0 = inlined_call_operand.vmem [shape: bf16[128,128], index: 0, kind: input, shape index: {}]   ;;  %s672_s2 = inlined_call_operand.vmem [shape: bf16[128,128], index: 2, kind: output, shape index: {}]  }
   0x1   :  { %v567_v0 = vld [vmem:[%s670_s1] sm:$0xff]   ;;  %v568_v1 = vld [vmem:[%s670_s1 + $0x8] sm:$0xff]   ;;  %v569_v2 = vld [vmem:[%s670_s1 + $0x10] sm:$0xff]  }
   0x2   :  { %519 = vmatprep.subr.bf16.mxu0 %v567_v0  ;;  %551 = vmatprep.subr.bf16.mxu1 %v567_v0  ;;  %v570_v3 = vld [vmem:[%s670_s1 + $0x18] sm:$0xff]   ;;  %v575_v4 = vld [vmem:[%s671_s0] sm:$0xff]   ;;  %v572_v7 = vld [vmem:[%s670_s1 + $0x28] sm:$0xff]  }
   0x3   :  { %520 = vmatpush3.bf16.msra.mxu0 %v567_v0  ;;  %559 = vmatpush3.bf16.msra.mxu1 %v567_v0  ;;  %v576_v5 = vld [vmem:[%s671_s0 + $0x20] sm:$0xff]   ;;  %v573_v8 = vld [vmem:[%s670_s1 + $0x30] sm:$0xff]   ;;  %v574_v9 = vld [vmem:[%s670_s1 + $0x38] sm:$0xff]  }
   0x4   :  { %521 = vmatprep.subr.bf16.mxu0 %v568_v1  ;;  %552 = vmatprep.subr.bf16.mxu1 %v568_v1  ;;  %v571_v6 = vld [vmem:[%s670_s1 + $0x20] sm:$0xff]   ;;  %v577_v10 = vld [vmem:[%s671_s0 + $0x8] sm:$0xff]   ;;  %v579_v12 = vld [vmem:[%s671_s0 + $0x10] sm:$0xff]  }
   0x5   :  { %535 = vmatprep.mubr.bf16.mxu0 %v575_v4  ;;  %543 = vmatprep.mubr.bf16.mxu1 %v576_v5  ;;  %v578_v11 = vld [vmem:[%s671_s0 + $0x28] sm:$0xff]   ;;  %v580_v13 = vld [vmem:[%s671_s0 + $0x30] sm:$0xff]   ;;  %v581_v14 = vld [vmem:[%s671_s0 + $0x18] sm:$0xff]  }
   0x6   :  { %v582_v15 = vld [vmem:[%s671_s0 + $0x38] sm:$0xff]  }
   0x7   :  { %522 = vmatpush3.bf16.msra.mxu0 %v568_v1  ;;  %560 = vmatpush3.bf16.msra.mxu1 %v568_v1 }
   0x8   :  { %523 = vmatprep.subr.bf16.mxu0 %v569_v2  ;;  %553 = vmatprep.subr.bf16.mxu1 %v569_v2 }
   0xb   :  { %524 = vmatpush3.bf16.msra.mxu0 %v569_v2  ;;  %561 = vmatpush3.bf16.msra.mxu1 %v569_v2 }
   0xc   :  { %525 = vmatprep.subr.bf16.mxu0 %v570_v3  ;;  %554 = vmatprep.subr.bf16.mxu1 %v570_v3 }
   0xf   :  { %526 = vmatpush3.bf16.msra.mxu0 %v570_v3  ;;  %562 = vmatpush3.bf16.msra.mxu1 %v570_v3 }
  0x10   :  { %527 = vmatprep.subr.bf16.mxu0 %v571_v6  ;;  %555 = vmatprep.subr.bf16.mxu1 %v571_v6 }
  0x13   :  { %528 = vmatpush3.bf16.msra.mxu0 %v571_v6  ;;  %563 = vmatpush3.bf16.msra.mxu1 %v571_v6 }
  0x14   :  { %529 = vmatprep.subr.bf16.mxu0 %v572_v7  ;;  %556 = vmatprep.subr.bf16.mxu1 %v572_v7 }
  0x17   :  { %530 = vmatpush3.bf16.msra.mxu0 %v572_v7  ;;  %564 = vmatpush3.bf16.msra.mxu1 %v572_v7 }
  0x18   :  { %531 = vmatprep.subr.bf16.mxu0 %v573_v8  ;;  %557 = vmatprep.subr.bf16.mxu1 %v573_v8 }
  0x1b   :  { %532 = vmatpush3.bf16.msra.mxu0 %v573_v8  ;;  %565 = vmatpush3.bf16.msra.mxu1 %v573_v8 }
  0x1c   :  { %533 = vmatprep.subr.bf16.mxu0 %v574_v9  ;;  %558 = vmatprep.subr.bf16.mxu1 %v574_v9 }
  0x1f   :  { %534 = vmatpush3.bf16.msra.mxu0 %v574_v9  ;;  %566 = vmatpush3.bf16.msra.mxu1 %v574_v9 }
  0x22   :  { %536 = vmatmul.mubr.bf16.vlgmr.msra.gmra.mrb[0].mxu0 %v577_v10  ;;  %544 = vmatmul.mubr.bf16.vlgmr.msra.gmra.mrb[0].mxu1 %v578_v11 }
  0x23   :  { %539 = vmatprep.mubr.bf16.mxu0 %v579_v12  ;;  %547 = vmatprep.mubr.bf16.mxu1 %v580_v13 }
  0x2a   :  { %540 = vmatmul.mubr.bf16.gmra.mrb[4].mxu0 %v581_v14  ;;  %548 = vmatmul.mubr.bf16.gmra.mrb[4].mxu1 %v582_v15 }
  0xf5   :  { %v537_v16 = vpop.f32.mrb[0].mxu0  ;;  %v545_v17 = vpop.f32.mrb[0].mxu1 }
  0xf6   :  { %v210_v18 = vpop.f32.mrb[1].mxu0  ;;  %v242_v19 = vpop.f32.mrb[1].mxu1 }
  0xf7   :  { %v538_v20 = vpop.f32.mrb[2].mxu0  ;;  %v546_v21 = vpop.f32.mrb[2].mxu1 }
  0xf8   :  { %v464_v22 = vpack.c.bf16 %v538_v20, %v537_v16  ;;  %v484_v23 = vpack.c.bf16 %v546_v21, %v545_v17  ;;  %v213_v24 = vpop.f32.mrb[3].mxu0  ;;  %v245_v25 = vpop.f32.mrb[3].mxu1 }
  0xf9   :  { %v459_v26 = vpack.c.bf16 %v213_v24, %v210_v18  ;;  %v479_v27 = vpack.c.bf16 %v245_v25, %v242_v19 }
  0xfa   :  { %496 = vst [vmem:[%s672_s2 + $0x8] sm:$0xff] %v464_v22   ;;  %500 = vst [vmem:[%s672_s2 + $0x28] sm:$0xff] %v484_v23  }
  0xfb   :  { %460 = vst [vmem:[%s672_s2] sm:$0xff] %v459_v26   ;;  %499 = vst [vmem:[%s672_s2 + $0x20] sm:$0xff] %v479_v27  }
  0xfd   :  { %v541_v28 = vpop.f32.mrb[4].mxu0  ;;  %v549_v29 = vpop.f32.mrb[4].mxu1 }
  0xfe   :  { %v226_v30 = vpop.f32.mrb[5].mxu0  ;;  %v258_v31 = vpop.f32.mrb[5].mxu1 }
  0xff   :  { %v542_v32 = vpop.f32.mrb[6].mxu0  ;;  %v550_v33 = vpop.f32.mrb[6].mxu1 }
 0x100   :  { %v474_v34 = vpack.c.bf16 %v542_v32, %v541_v28  ;;  %v494_v35 = vpack.c.bf16 %v550_v33, %v549_v29  ;;  %v229_v36 = vpop.f32.mrb[7].mxu0  ;;  %v261_v37 = vpop.f32.mrb[7].mxu1 }
 0x101   :  { %v469_v38 = vpack.c.bf16 %v229_v36, %v226_v30  ;;  %v489_v39 = vpack.c.bf16 %v261_v37, %v258_v31 }
 0x102   :  { %498 = vst [vmem:[%s672_s2 + $0x18] sm:$0xff] %v474_v34   ;;  %502 = vst [vmem:[%s672_s2 + $0x38] sm:$0xff] %v494_v35  }
 0x103   :  { %497 = vst [vmem:[%s672_s2 + $0x10] sm:$0xff] %v469_v38   ;;  %501 = vst [vmem:[%s672_s2 + $0x30] sm:$0xff] %v489_v39  }

// kernel: gcn_model_ae_forward.4
= control target key start
LH: loop header
LB: loop body
LE: loop exit
PB: predicated region body
PF: predicated region fallthrough
CT: control target
= control target key end

     0   :  { %s583_s1 = inlined_call_operand.vmem [shape: bf16[128,128], index: 1, kind: input, shape index: {}]   ;;  %s584_s0 = inlined_call_operand.vmem [shape: bf16[128,128], index: 0, kind: input, shape index: {}]   ;;  %s585_s2 = inlined_call_operand.vmem [shape: bf16[128,128], index: 2, kind: output, shape index: {}]  }
   0x1   :  { %v480_v0 = vld [vmem:[%s583_s1] sm:$0xff]   ;;  %v481_v1 = vld [vmem:[%s583_s1 + $0x8] sm:$0xff]   ;;  %v482_v2 = vld [vmem:[%s583_s1 + $0x10] sm:$0xff]  }
   0x2   :  { %432 = vmatprep.subr.bf16.mxu0 %v480_v0  ;;  %464 = vmatprep.subr.bf16.mxu1 %v480_v0  ;;  %v483_v3 = vld [vmem:[%s583_s1 + $0x18] sm:$0xff]   ;;  %v488_v4 = vld [vmem:[%s584_s0] sm:$0xff]   ;;  %v485_v7 = vld [vmem:[%s583_s1 + $0x28] sm:$0xff]  }
   0x3   :  { %433 = vmatpush3.bf16.msra.mxu0 %v480_v0  ;;  %472 = vmatpush3.bf16.msra.mxu1 %v480_v0  ;;  %v489_v5 = vld [vmem:[%s584_s0 + $0x20] sm:$0xff]   ;;  %v486_v8 = vld [vmem:[%s583_s1 + $0x30] sm:$0xff]   ;;  %v487_v9 = vld [vmem:[%s583_s1 + $0x38] sm:$0xff]  }
   0x4   :  { %434 = vmatprep.subr.bf16.mxu0 %v481_v1  ;;  %465 = vmatprep.subr.bf16.mxu1 %v481_v1  ;;  %v484_v6 = vld [vmem:[%s583_s1 + $0x20] sm:$0xff]   ;;  %v490_v10 = vld [vmem:[%s584_s0 + $0x8] sm:$0xff]   ;;  %v492_v12 = vld [vmem:[%s584_s0 + $0x10] sm:$0xff]  }
   0x5   :  { %448 = vmatprep.mubr.bf16.mxu0 %v488_v4  ;;  %456 = vmatprep.mubr.bf16.mxu1 %v489_v5  ;;  %v491_v11 = vld [vmem:[%s584_s0 + $0x28] sm:$0xff]   ;;  %v493_v13 = vld [vmem:[%s584_s0 + $0x30] sm:$0xff]   ;;  %v494_v14 = vld [vmem:[%s584_s0 + $0x18] sm:$0xff]  }
   0x6   :  { %v495_v15 = vld [vmem:[%s584_s0 + $0x38] sm:$0xff]  }
   0x7   :  { %435 = vmatpush3.bf16.msra.mxu0 %v481_v1  ;;  %473 = vmatpush3.bf16.msra.mxu1 %v481_v1 }
   0x8   :  { %436 = vmatprep.subr.bf16.mxu0 %v482_v2  ;;  %466 = vmatprep.subr.bf16.mxu1 %v482_v2 }
   0xb   :  { %437 = vmatpush3.bf16.msra.mxu0 %v482_v2  ;;  %474 = vmatpush3.bf16.msra.mxu1 %v482_v2 }
   0xc   :  { %438 = vmatprep.subr.bf16.mxu0 %v483_v3  ;;  %467 = vmatprep.subr.bf16.mxu1 %v483_v3 }
   0xf   :  { %439 = vmatpush3.bf16.msra.mxu0 %v483_v3  ;;  %475 = vmatpush3.bf16.msra.mxu1 %v483_v3 }
  0x10   :  { %440 = vmatprep.subr.bf16.mxu0 %v484_v6  ;;  %468 = vmatprep.subr.bf16.mxu1 %v484_v6 }
  0x13   :  { %441 = vmatpush3.bf16.msra.mxu0 %v484_v6  ;;  %476 = vmatpush3.bf16.msra.mxu1 %v484_v6 }
  0x14   :  { %442 = vmatprep.subr.bf16.mxu0 %v485_v7  ;;  %469 = vmatprep.subr.bf16.mxu1 %v485_v7 }
  0x17   :  { %443 = vmatpush3.bf16.msra.mxu0 %v485_v7  ;;  %477 = vmatpush3.bf16.msra.mxu1 %v485_v7 }
  0x18   :  { %444 = vmatprep.subr.bf16.mxu0 %v486_v8  ;;  %470 = vmatprep.subr.bf16.mxu1 %v486_v8 }
  0x1b   :  { %445 = vmatpush3.bf16.msra.mxu0 %v486_v8  ;;  %478 = vmatpush3.bf16.msra.mxu1 %v486_v8 }
  0x1c   :  { %446 = vmatprep.subr.bf16.mxu0 %v487_v9  ;;  %471 = vmatprep.subr.bf16.mxu1 %v487_v9 }
  0x1f   :  { %447 = vmatpush3.bf16.msra.mxu0 %v487_v9  ;;  %479 = vmatpush3.bf16.msra.mxu1 %v487_v9 }
  0x22   :  { %449 = vmatmul.mubr.bf16.vlgmr.msra.gmra.mrb[0].mxu0 %v490_v10  ;;  %457 = vmatmul.mubr.bf16.vlgmr.msra.gmra.mrb[0].mxu1 %v491_v11 }
  0x23   :  { %452 = vmatprep.mubr.bf16.mxu0 %v492_v12  ;;  %460 = vmatprep.mubr.bf16.mxu1 %v493_v13 }
  0x2a   :  { %453 = vmatmul.mubr.bf16.gmra.mrb[4].mxu0 %v494_v14  ;;  %461 = vmatmul.mubr.bf16.gmra.mrb[4].mxu1 %v495_v15 }
  0xf5   :  { %v450_v16 = vpop.f32.mrb[0].mxu0  ;;  %v458_v17 = vpop.f32.mrb[0].mxu1 }
  0xf6   :  { %v174_v18 = vpop.f32.mrb[1].mxu0  ;;  %v206_v19 = vpop.f32.mrb[1].mxu1 }
  0xf7   :  { %v451_v20 = vpop.f32.mrb[2].mxu0  ;;  %v459_v21 = vpop.f32.mrb[2].mxu1 }
  0xf8   :  { %v377_v22 = vpack.c.bf16 %v451_v20, %v450_v16  ;;  %v397_v23 = vpack.c.bf16 %v459_v21, %v458_v17  ;;  %v177_v24 = vpop.f32.mrb[3].mxu0  ;;  %v209_v25 = vpop.f32.mrb[3].mxu1 }
  0xf9   :  { %v372_v26 = vpack.c.bf16 %v177_v24, %v174_v18  ;;  %v392_v27 = vpack.c.bf16 %v209_v25, %v206_v19 }
  0xfa   :  { %409 = vst [vmem:[%s585_s2 + $0x8] sm:$0xff] %v377_v22   ;;  %413 = vst [vmem:[%s585_s2 + $0x28] sm:$0xff] %v397_v23  }
  0xfb   :  { %373 = vst [vmem:[%s585_s2] sm:$0xff] %v372_v26   ;;  %412 = vst [vmem:[%s585_s2 + $0x20] sm:$0xff] %v392_v27  }
  0xfd   :  { %v454_v28 = vpop.f32.mrb[4].mxu0  ;;  %v462_v29 = vpop.f32.mrb[4].mxu1 }
  0xfe   :  { %v190_v30 = vpop.f32.mrb[5].mxu0  ;;  %v222_v31 = vpop.f32.mrb[5].mxu1 }
  0xff   :  { %v455_v32 = vpop.f32.mrb[6].mxu0  ;;  %v463_v33 = vpop.f32.mrb[6].mxu1 }
 0x100   :  { %v387_v34 = vpack.c.bf16 %v455_v32, %v454_v28  ;;  %v407_v35 = vpack.c.bf16 %v463_v33, %v462_v29  ;;  %v193_v36 = vpop.f32.mrb[7].mxu0  ;;  %v225_v37 = vpop.f32.mrb[7].mxu1 }
 0x101   :  { %v382_v38 = vpack.c.bf16 %v193_v36, %v190_v30  ;;  %v402_v39 = vpack.c.bf16 %v225_v37, %v222_v31 }
 0x102   :  { %411 = vst [vmem:[%s585_s2 + $0x18] sm:$0xff] %v387_v34   ;;  %415 = vst [vmem:[%s585_s2 + $0x38] sm:$0xff] %v407_v35  }
 0x103   :  { %410 = vst [vmem:[%s585_s2 + $0x10] sm:$0xff] %v382_v38   ;;  %414 = vst [vmem:[%s585_s2 + $0x30] sm:$0xff] %v402_v39  }

// kernel: gcn_model_ae_forward.5
= control target key start
LH: loop header
LB: loop body
LE: loop exit
PB: predicated region body
PF: predicated region fallthrough
CT: control target
= control target key end

     0   :  { %s935_s1 = inlined_call_operand.vmem [shape: bf16[128,128], index: 1, kind: input, shape index: {}]   ;;  %s936_s0 = inlined_call_operand.vmem [shape: bf16[128,128], index: 0, kind: input, shape index: {}]   ;;  %s937_s2 = inlined_call_operand.vmem [shape: bf16[128,128], index: 2, kind: input, shape index: {}]   ;;  %s938_s3 = inlined_call_operand.vmem [shape: bf16[128,128], index: 3, kind: output, shape index: {}]  }
   0x1   :  { %v795_v0 = vld [vmem:[%s935_s1] sm:$0xff]   ;;  %v796_v1 = vld [vmem:[%s935_s1 + $0x8] sm:$0xff]   ;;  %v797_v2 = vld [vmem:[%s935_s1 + $0x10] sm:$0xff]  }
   0x2   :  { %731 = vmatprep.subr.bf16.mxu0 %v795_v0  ;;  %v798_v3 = vld [vmem:[%s935_s1 + $0x18] sm:$0xff]   ;;  %v803_v4 = vld [vmem:[%s936_s0] sm:$0xff]   ;;  %v800_v6 = vld [vmem:[%s935_s1 + $0x28] sm:$0xff]  }
   0x3   :  { %732 = vmatpush3.bf16.msra.mxu0 %v795_v0  ;;  %747 = vmatprep.mubr.bf16.mxu0 %v803_v4  ;;  %v799_v5 = vld [vmem:[%s935_s1 + $0x20] sm:$0xff]   ;;  %v812_v8 = vld [vmem:[%s937_s2 + $0x8] sm:$0xff]   ;;  %v801_v9 = vld [vmem:[%s935_s1 + $0x30] sm:$0xff]  }
   0x4   :  { %733 = vmatprep.subr.bf16.mxu0 %v796_v1  ;;  %v811_v7 = vld [vmem:[%s937_s2] sm:$0xff]   ;;  %v813_v10 = vld [vmem:[%s937_s2 + $0x10] sm:$0xff]   ;;  %v802_v11 = vld [vmem:[%s935_s1 + $0x38] sm:$0xff]  }
   0x5   :  { %763 = vmatprep.subr.bf16.mxu1 %v811_v7  ;;  %v814_v12 = vld [vmem:[%s937_s2 + $0x18] sm:$0xff]   ;;  %v815_v13 = vld [vmem:[%s937_s2 + $0x20] sm:$0xff]   ;;  %v804_v14 = vld [vmem:[%s936_s0 + $0x8] sm:$0xff]  }
   0x6   :  { %764 = vmatpush3.bf16.msra.mxu1 %v811_v7  ;;  %v805_v15 = vld [vmem:[%s936_s0 + $0x10] sm:$0xff]   ;;  %v816_v16 = vld [vmem:[%s937_s2 + $0x28] sm:$0xff]   ;;  %v806_v17 = vld [vmem:[%s936_s0 + $0x18] sm:$0xff]  }
   0x7   :  { %734 = vmatpush3.bf16.msra.mxu0 %v796_v1  ;;  %765 = vmatprep.subr.bf16.mxu1 %v812_v8  ;;  %v807_v18 = vld [vmem:[%s936_s0 + $0x20] sm:$0xff]   ;;  %v808_v19 = vld [vmem:[%s936_s0 + $0x28] sm:$0xff]   ;;  %v809_v20 = vld [vmem:[%s936_s0 + $0x30] sm:$0xff]  }
   0x8   :  { %735 = vmatprep.subr.bf16.mxu0 %v797_v2  ;;  %v810_v21 = vld [vmem:[%s936_s0 + $0x38] sm:$0xff]   ;;  %v817_v22 = vld [vmem:[%s937_s2 + $0x30] sm:$0xff]  }
   0x9   :  { %v818_v23 = vld [vmem:[%s937_s2 + $0x38] sm:$0xff]  }
   0xa   :  { %766 = vmatpush3.bf16.msra.mxu1 %v812_v8 }
   0xb   :  { %736 = vmatpush3.bf16.msra.mxu0 %v797_v2  ;;  %767 = vmatprep.subr.bf16.mxu1 %v813_v10 }
   0xc   :  { %737 = vmatprep.subr.bf16.mxu0 %v798_v3 }
   0xe   :  { %768 = vmatpush3.bf16.msra.mxu1 %v813_v10 }
   0xf   :  { %738 = vmatpush3.bf16.msra.mxu0 %v798_v3  ;;  %769 = vmatprep.subr.bf16.mxu1 %v814_v12 }
  0x10   :  { %739 = vmatprep.subr.bf16.mxu0 %v799_v5 }
  0x12   :  { %770 = vmatpush3.bf16.msra.mxu1 %v814_v12 }
  0x13   :  { %740 = vmatpush3.bf16.msra.mxu0 %v799_v5  ;;  %771 = vmatprep.subr.bf16.mxu1 %v815_v13 }
  0x14   :  { %741 = vmatprep.subr.bf16.mxu0 %v800_v6 }
  0x16   :  { %772 = vmatpush3.bf16.msra.mxu1 %v815_v13 }
  0x17   :  { %742 = vmatpush3.bf16.msra.mxu0 %v800_v6  ;;  %773 = vmatprep.subr.bf16.mxu1 %v816_v16 }
  0x18   :  { %743 = vmatprep.subr.bf16.mxu0 %v801_v9 }
  0x1a   :  { %774 = vmatpush3.bf16.msra.mxu1 %v816_v16 }
  0x1b   :  { %744 = vmatpush3.bf16.msra.mxu0 %v801_v9  ;;  %775 = vmatprep.subr.bf16.mxu1 %v817_v22 }
  0x1c   :  { %745 = vmatprep.subr.bf16.mxu0 %v802_v11 }
  0x1e   :  { %776 = vmatpush3.bf16.msra.mxu1 %v817_v22 }
  0x1f   :  { %746 = vmatpush3.bf16.msra.mxu0 %v802_v11  ;;  %777 = vmatprep.subr.bf16.mxu1 %v818_v23 }
  0x22   :  { %748 = vmatmul.mubr.bf16.vlgmr.msra.gmra.mrb[0].mxu0 %v804_v14  ;;  %778 = vmatpush3.bf16.msra.mxu1 %v818_v23 }
  0x23   :  { %751 = vmatprep.mubr.bf16.mxu0 %v805_v15 }
  0x2a   :  { %752 = vmatmul.mubr.bf16.gmra.mrb[4].mxu0 %v806_v17 }
  0x2b   :  { %755 = vmatprep.mubr.bf16.mxu0 %v807_v18 }
  0x32   :  { %756 = vmatmul.mubr.bf16.gmra.mrb[8].mxu0 %v808_v19 }
  0x33   :  { %759 = vmatprep.mubr.bf16.mxu0 %v809_v20 }
  0x3a   :  { %760 = vmatmul.mubr.bf16.gmra.mrb[12].mxu0 %v810_v21 }
  0xf5   :  { %v749_v24 = vpop.f32.mrb[0].mxu0 }
  0xf6   :  { %v213_v25 = vpop.f32.mrb[1].mxu0  ;;  %v329_v27 = vmax.f32 %v749_v24, 0.0 }
  0xf7   :  { %v750_v26 = vpop.f32.mrb[2].mxu0  ;;  %v327_v30 = vmax.f32 %v213_v25, 0.0 }
  0xf8   :  { %v330_v28 = vmax.f32 %v750_v26, 0.0  ;;  %v216_v29 = vpop.f32.mrb[3].mxu0 }
  0xf9   :  { %v328_v31 = vmax.f32 %v216_v29, 0.0 }
  0xfa   :  { %v344_v32 = vpack.c.bf16 %v330_v28, %v329_v27 }
  0xfb   :  { %v343_v33 = vpack.c.bf16 %v328_v31, %v327_v30 }
  0xfd   :  { %v753_v34 = vpop.f32.mrb[4].mxu0  ;;  %779 = vmatprep.mubr.bf16.mxu1 %v343_v33 }
  0xfe   :  { %v229_v35 = vpop.f32.mrb[5].mxu0  ;;  %780 = vmatmul.mubr.bf16.vlgmr.msra.gmra.mrb[0].mxu1 %v344_v32  ;;  %v333_v37 = vmax.f32 %v753_v34, 0.0 }
  0xff   :  { %v754_v36 = vpop.f32.mrb[6].mxu0  ;;  %v331_v40 = vmax.f32 %v229_v35, 0.0 }
 0x100   :  { %v334_v38 = vmax.f32 %v754_v36, 0.0  ;;  %v232_v39 = vpop.f32.mrb[7].mxu0 }
 0x101   :  { %v332_v41 = vmax.f32 %v232_v39, 0.0 }
 0x102   :  { %v346_v42 = vpack.c.bf16 %v334_v38, %v333_v37 }
 0x103   :  { %v345_v43 = vpack.c.bf16 %v332_v41, %v331_v40 }
 0x105   :  { %v757_v44 = vpop.f32.mrb[8].mxu0  ;;  %783 = vmatprep.mubr.bf16.mxu1 %v345_v43 }
 0x106   :  { %v245_v45 = vpop.f32.mrb[9].mxu0  ;;  %784 = vmatmul.mubr.bf16.gmra.mrb[4].mxu1 %v346_v42  ;;  %v337_v47 = vmax.f32 %v757_v44, 0.0 }
 0x107   :  { %v758_v46 = vpop.f32.mrb[10].mxu0  ;;  %v335_v50 = vmax.f32 %v245_v45, 0.0 }
 0x108   :  { %v338_v48 = vmax.f32 %v758_v46, 0.0  ;;  %v248_v49 = vpop.f32.mrb[11].mxu0 }
 0x109   :  { %v336_v51 = vmax.f32 %v248_v49, 0.0 }
 0x10a   :  { %v348_v52 = vpack.c.bf16 %v338_v48, %v337_v47 }
 0x10b   :  { %v347_v53 = vpack.c.bf16 %v336_v51, %v335_v50 }
 0x10d   :  { %v761_v54 = vpop.f32.mrb[12].mxu0  ;;  %787 = vmatprep.mubr.bf16.mxu1 %v347_v53 }
 0x10e   :  { %v261_v55 = vpop.f32.mrb[13].mxu0  ;;  %788 = vmatmul.mubr.bf16.gmra.mrb[8].mxu1 %v348_v52  ;;  %v341_v57 = vmax.f32 %v761_v54, 0.0 }
 0x10f   :  { %v762_v56 = vpop.f32.mrb[14].mxu0  ;;  %v339_v60 = vmax.f32 %v261_v55, 0.0 }
 0x110   :  { %v342_v58 = vmax.f32 %v762_v56, 0.0  ;;  %v264_v59 = vpop.f32.mrb[15].mxu0 }
 0x111   :  { %v340_v61 = vmax.f32 %v264_v59, 0.0 }
 0x112   :  { %v350_v62 = vpack.c.bf16 %v342_v58, %v341_v57 }
 0x113   :  { %v349_v63 = vpack.c.bf16 %v340_v61, %v339_v60 }
 0x115   :  { %791 = vmatprep.mubr.bf16.mxu1 %v349_v63 }
 0x116   :  { %792 = vmatmul.mubr.bf16.gmra.mrb[12].mxu1 %v350_v62 }
 0x1d1   :  { %v781_v0 = vpop.f32.mrb[0].mxu1 }
 0x1d2   :  { %v449_v1 = vpop.f32.mrb[1].mxu1 }
 0x1d3   :  { %v782_v2 = vpop.f32.mrb[2].mxu1 }
 0x1d4   :  { %v660_v3 = vpack.c.bf16 %v782_v2, %v781_v0  ;;  %v452_v4 = vpop.f32.mrb[3].mxu1 }
 0x1d5   :  { %v655_v5 = vpack.c.bf16 %v452_v4, %v449_v1 }
 0x1d6   :  { %692 = vst [vmem:[%s938_s3 + $0x8] sm:$0xff] %v660_v3  }
 0x1d7   :  { %656 = vst [vmem:[%s938_s3] sm:$0xff] %v655_v5  }
 0x1d9   :  { %v785_v6 = vpop.f32.mrb[4].mxu1 }
 0x1da   :  { %v465_v7 = vpop.f32.mrb[5].mxu1 }
 0x1db   :  { %v786_v8 = vpop.f32.mrb[6].mxu1 }
 0x1dc   :  { %v670_v9 = vpack.c.bf16 %v786_v8, %v785_v6  ;;  %v468_v10 = vpop.f32.mrb[7].mxu1 }
 0x1dd   :  { %v665_v11 = vpack.c.bf16 %v468_v10, %v465_v7 }
 0x1de   :  { %694 = vst [vmem:[%s938_s3 + $0x18] sm:$0xff] %v670_v9  }
 0x1df   :  { %693 = vst [vmem:[%s938_s3 + $0x10] sm:$0xff] %v665_v11  }
 0x1e1   :  { %v789_v12 = vpop.f32.mrb[8].mxu1 }
 0x1e2   :  { %v481_v13 = vpop.f32.mrb[9].mxu1 }
 0x1e3   :  { %v790_v14 = vpop.f32.mrb[10].mxu1 }
 0x1e4   :  { %v680_v15 = vpack.c.bf16 %v790_v14, %v789_v12  ;;  %v484_v16 = vpop.f32.mrb[11].mxu1 }
 0x1e5   :  { %v675_v17 = vpack.c.bf16 %v484_v16, %v481_v13 }
 0x1e6   :  { %696 = vst [vmem:[%s938_s3 + $0x28] sm:$0xff] %v680_v15  }
 0x1e7   :  { %695 = vst [vmem:[%s938_s3 + $0x20] sm:$0xff] %v675_v17  }
 0x1e9   :  { %v793_v18 = vpop.f32.mrb[12].mxu1 }
 0x1ea   :  { %v497_v19 = vpop.f32.mrb[13].mxu1 }
 0x1eb   :  { %v794_v20 = vpop.f32.mrb[14].mxu1 }
 0x1ec   :  { %v690_v21 = vpack.c.bf16 %v794_v20, %v793_v18  ;;  %v500_v22 = vpop.f32.mrb[15].mxu1 }
 0x1ed   :  { %v685_v23 = vpack.c.bf16 %v500_v22, %v497_v19 }
 0x1ee   :  { %698 = vst [vmem:[%s938_s3 + $0x38] sm:$0xff] %v690_v21  }
 0x1ef   :  { %697 = vst [vmem:[%s938_s3 + $0x30] sm:$0xff] %v685_v23  }

</bundles_post_ra>
